<compile_context>
chip_gen: v7x
topology: tpu7x:2x2x1
jax: 0.10.0
libtpu: 0.0.40
codegen_flags: <defaults>
</compile_context>

<pallas_src>
import jax
import jax.numpy as jnp
from jax.experimental import pallas as pl
from jax.experimental.pallas import tpu as pltpu


# ----------------------------------------------------------------------------
# Hot path: identity (no kernel launch, no HBM round-trip).
# ----------------------------------------------------------------------------
def edge_generate(edges, questions=None, users=None):
    """EdgeGenerate.forward: identity on `edges`. Zero-cost."""
    return edges


# ----------------------------------------------------------------------------
# Materializing path #1: direct HBM -> HBM DMA (preferred copy).
# ----------------------------------------------------------------------------
def _dma_copy_kernel(edges_hbm, out_hbm, sem):
    # Single whole-array DMA: no VMEM staging, no per-tile grid overhead.
    cp = pltpu.make_async_copy(edges_hbm, out_hbm, sem)
    cp.start()
    cp.wait()


def edge_generate_copy(edges, questions=None, users=None):
    """Materializing variant: one HBM->HBM async DMA into a fresh buffer."""
    return pl.pallas_call(
        _dma_copy_kernel,
        out_shape=jax.ShapeDtypeStruct(edges.shape, edges.dtype),
        in_specs=[pl.BlockSpec(memory_space=pl.ANY)],
        out_specs=pl.BlockSpec(memory_space=pl.ANY),
        scratch_shapes=[pltpu.SemaphoreType.DMA(())],
    )(edges)


# ----------------------------------------------------------------------------
# Materializing path #2: VMEM-staged tiled copy (fallback, review-tuned).
# ----------------------------------------------------------------------------
def _copy_kernel(edges_ref, out_ref):
    out_ref[...] = edges_ref[...]


def _sublane_multiple(dtype) -> int:
    """Minimum sublane (second-minor) tile multiple for the given dtype."""
    itemsize = jnp.dtype(dtype).itemsize
    if itemsize >= 4:
        return 8
    if itemsize == 2:
        return 16
    return 32  # int8 / fp8


def _round_up(x: int, m: int) -> int:
    return ((x + m - 1) // m) * m


def edge_generate_copy_tiled(edges, questions=None, users=None, *,
                             target_block_bytes=4 << 20):
    """Tiled VMEM-staged copy of `edges`.

    Full-row-width blocks (lane-dense, contiguous HBM per block) on a 1-D row
    grid; row count per block is scaled with dtype so each block moves
    ~target_block_bytes regardless of element size.  Prefer
    `edge_generate_copy` (pure DMA) unless a staged pipeline is required.
    """
    R, C = edges.shape
    itemsize = jnp.dtype(edges.dtype).itemsize
    sub = _sublane_multiple(edges.dtype)

    # Full row width: one fully contiguous HBM region per block, maximally
    # lane-dense output (unmasked vst except possibly the boundary row tile).
    tc = C

    # dtype-scaled rows per block so block bytes stay ~constant.
    bytes_per_row = max(tc * itemsize, 1)
    rows_for_target = max(sub, target_block_bytes // bytes_per_row)
    tr = _round_up(min(rows_for_target, R), sub)
    if tr >= R:
        tr = R  # single full-extent row block (full array dim is always legal)

    # VMEM budget: in + out, each double-buffered, plus slack.  Cap at 48 MiB
    # so we never request v7x's entire 64 MiB per-core VMEM; raise rather than
    # silently clamp below what the tiles need.
    tile_bytes = tr * tc * itemsize
    vmem_needed = 4 * tile_bytes + (1 << 20)
    vmem_cap = 48 << 20
    if vmem_needed > vmem_cap:
        raise ValueError(
            f"Tiled copy needs ~{vmem_needed >> 20} MiB VMEM (> {vmem_cap >> 20} MiB cap); "
            "use edge_generate_copy (HBM->HBM DMA) or lower target_block_bytes."
        )
    vmem_limit = max(vmem_needed, 16 << 20)

    grid = (pl.cdiv(R, tr),)

    return pl.pallas_call(
        _copy_kernel,
        out_shape=jax.ShapeDtypeStruct((R, C), edges.dtype),
        grid=grid,
        in_specs=[pl.BlockSpec((tr, tc), lambda i: (i, 0))],
        out_specs=pl.BlockSpec((tr, tc), lambda i: (i, 0)),
        compiler_params=pltpu.CompilerParams(
            # "parallel" lets v7x's two TensorCores split the row grid; no-op
            # on single-core v5e/v6e.  Default Buffered(2) pipelining is kept.
            dimension_semantics=("parallel",),
            vmem_limit_bytes=vmem_limit,
        ),
    )(edges)


if __name__ == "__main__":
    key = jax.random.PRNGKey(0)
    k_e, k_q, k_u = jax.random.split(key, 3)

    num_q, num_u, hidden = 16, 128, 32
    edges = jax.random.normal(k_e, (num_q, num_u), dtype=jnp.float32)
    questions = jax.random.normal(k_q, (num_q, hidden), dtype=jnp.float32)
    users = jax.random.normal(k_u, (num_u, hidden), dtype=jnp.float32)

    # 1) Hot path: identity, zero cost.
    out_fast = jax.block_until_ready(edge_generate(edges, questions, users))
    assert out_fast.shape == edges.shape and out_fast.dtype == edges.dtype
    assert bool(jnp.array_equal(out_fast, edges))

    # 2) Preferred materializing copy: single HBM->HBM DMA.
    out_dma = jax.block_until_ready(edge_generate_copy(edges, questions, users))
    assert out_dma.shape == edges.shape and out_dma.dtype == edges.dtype
    assert bool(jnp.array_equal(out_dma, edges))

    # 3) Tiled VMEM-staged fallback (full-row-width 1-D blocks).
    out_tiled = jax.block_until_ready(
        edge_generate_copy_tiled(edges, questions, users))
    assert out_tiled.shape == edges.shape and out_tiled.dtype == edges.dtype
    assert bool(jnp.array_equal(out_tiled, edges))

    print("KERNEL_OK")
</pallas_src>

<mosaic_0001>
module attributes {stable_mosaic.version = 11 : i64} {
  func.func @_dma_copy_kernel(%arg0: memref<16x128xf32, #tpu.memory_space<any>>, %arg1: memref<16x128xf32, #tpu.memory_space<any>>, %arg2: memref<!tpu.dma_semaphore, #tpu.memory_space<semaphore_mem>>) attributes {dimension_semantics = [], scalar_prefetch = 0 : i64, scratch_operands = 1 : i64, tpu.core_type = #tpu.core_type<tc>} {
    tpu.enqueue_dma source(%arg0 : memref<16x128xf32, #tpu.memory_space<any>>) target(%arg1 : memref<16x128xf32, #tpu.memory_space<any>>) target_semaphore(%arg2 : memref<!tpu.dma_semaphore, #tpu.memory_space<semaphore_mem>>)
    tpu.wait_dma2 semaphore(%arg2 : memref<!tpu.dma_semaphore, #tpu.memory_space<semaphore_mem>>) src(%arg0 : memref<16x128xf32, #tpu.memory_space<any>>) dst(%arg1 : memref<16x128xf32, #tpu.memory_space<any>>)
    return
  }
}

</mosaic_0001>

<bundles_post_ra>
// kernel: tpu_custom_call.1
= control target key start
LH: loop header
LB: loop body
LE: loop exit
PB: predicated region body
PF: predicated region fallthrough
CT: control target
= control target key end

     0   :  { %s34_s6 = smov [#allocation2]   ;;  %s35_s7 = smov [#allocation3]   ;;  %s53_s0 = inlined_call_operand.hbm [shape: f32[16,128], index: 0, kind: input, shape index: {}]   ;;  %s54_s1 = inlined_call_operand.hbm [shape: f32[16,128], index: 1, kind: output, shape index: {}]  }
   0x1   :  { %s36_s8 = smov 0  }
   0x2   :  { %18 = dma.general %s53_s0, 256, %s54_s1, %s34_s6, %s35_s7, [#allocation4], %s36_s8, 0  }
   0x3   :  { %32 = dma.done.wait [#allocation2], 256 }
   0x4   :  { %33 = vsyncadd [#allocation2], 4294967040 }
   0x5   :  { %22 = vsyncmov [#allocation2] }
   0x8   :  { %s23_s13 = vpop.sfrf %22 }
   0x9   :  { %p28_p0 = scmp.ne.s32.totalorder %s23_s13, 0 }
   0xb   :  { %27 = shalt.err (%p28_p0)  }

</bundles_post_ra>
